<compile_context>
chip_gen: v6e
topology: v6e:2x2x1
jax: 0.10.0
libtpu: 0.0.40
codegen_flags: <defaults>
</compile_context>

<pallas_src>
import math

import jax
import jax.numpy as jnp
import numpy as np
from jax.experimental import pallas as pl
from jax.experimental.pallas import tpu as pltpu

# ---------------- model hyper-parameters (small, consistent with module) ----
B = 2           # batch
S = 8           # seq len (shared by q / k / v in this example)
D = 32          # d_model
H = 4           # num_heads
DK = D // H     # d_k = 8
N = B * S       # tokens per tensor
SCALE = 1.0 / math.sqrt(DK)


# ---------------- the Pallas kernel ------------------------------------------
def mha_kernel(q_ref, k_ref, v_ref, w_ref, b_ref, bias_ref, o_ref):
    # q_ref/k_ref/v_ref: (B, S, D)
    # w_ref: (4, D, D)   stacked [Wq, Wk, Wv, Wo], each stored (in, out)
    # b_ref: (4, 1, D)   stacked [bq, bk, bv, bo]
    # bias_ref: (N, N)   additive block-diagonal-over-batch bias (0 / -1e9)
    # o_ref: (B, S, D)
    q2d = q_ref[...].reshape(N, D)          # tile-compatible merge, free
    k2d = k_ref[...].reshape(N, D)
    v2d = v_ref[...].reshape(N, D)

    def proj(x2d, idx):
        # leading-axis weight/bias select (no lane slicing), one small MXU push
        return (jnp.dot(x2d, w_ref[idx], preferred_element_type=jnp.float32)
                + b_ref[idx])

    q_p = proj(q2d, 0)                      # (N, D)
    k_p = proj(k2d, 1)
    v_p = proj(v2d, 2)

    # (N, D) -> (H, N, DK): one 2-D transpose + tile-aligned reshape (DK == 8)
    # + one batched minor-dim transpose.  No per-head slicing / stacking.
    def to_heads(x2d):
        return x2d.T.reshape(H, DK, N).transpose(0, 2, 1)   # (H, N, DK)

    qh = to_heads(q_p)
    kh = to_heads(k_p)
    vh = to_heads(v_p)

    # --- head-batched attention: one 3-D dot_general each ---------------------
    scores = jnp.einsum("hqd,hkd->hqk", qh, kh,
                        preferred_element_type=jnp.float32) * SCALE   # (H,N,N)
    # Remove cross-batch attention (and mask hook for the module's optional
    # mask): additive bias, 0 on same-batch pairs, -1e9 otherwise.
    scores = scores + bias_ref[...]

    m = jnp.max(scores, axis=-1, keepdims=True)
    e = jnp.exp(scores - m)
    attn = e * pl.reciprocal(jnp.sum(e, axis=-1, keepdims=True), approx=True)
    # dropout(attn) is identity in eval mode.
    ctx = jnp.einsum("hqk,hkd->hqd", attn, vh,
                     preferred_element_type=jnp.float32)              # (H,N,DK)

    # (H, N, DK) -> (N, D): batched minor-dim transpose + free reshape + 2-D T
    ctx2d = ctx.transpose(0, 2, 1).reshape(D, N).T                    # (N, D)

    # --- output projection, store (B, S, D) directly ---------------------------
    out = (jnp.dot(ctx2d, w_ref[3], preferred_element_type=jnp.float32)
           + b_ref[3])                                                # (N, D)
    o_ref[...] = out.reshape(B, S, D).astype(o_ref.dtype)


# ---------------- wrapper -----------------------------------------------------
def _batch_block_bias():
    # Host-side constant (no runtime XLA op): 0 inside each batch's diagonal
    # block, -1e9 across batches.
    rows = np.arange(N) // S
    bias = np.where(rows[:, None] == rows[None, :], 0.0, -1e9).astype(np.float32)
    return jnp.asarray(bias)


def multi_head_attention(q, k, v, w_all, b_all):
    """q, k, v: (B, S, D).  w_all: (4, D, D) = [Wq,Wk,Wv,Wo].  b_all: (4, 1, D)."""
    attn_bias = _batch_block_bias()                                   # (N, N)

    flops = (3 * 2 * N * D * D          # q/k/v projections
             + 2 * H * N * N * DK       # scores
             + 2 * H * N * N * DK       # context
             + 2 * N * D * D)           # output projection
    transcendentals = H * N * N + H * N
    bytes_accessed = 4 * (3 * N * D + 4 * D * D + 4 * D + N * N + N * D)

    return pl.pallas_call(
        mha_kernel,
        out_shape=jax.ShapeDtypeStruct((B, S, D), jnp.float32),
        grid_spec=pltpu.PrefetchScalarGridSpec(
            num_scalar_prefetch=0,
            grid=(1,),                                   # single step: batch folded
            in_specs=[
                pl.BlockSpec((B, S, D), lambda i: (0, 0, 0)),
                pl.BlockSpec((B, S, D), lambda i: (0, 0, 0)),
                pl.BlockSpec((B, S, D), lambda i: (0, 0, 0)),
                pl.BlockSpec((4, D, D), lambda i: (0, 0, 0)),
                pl.BlockSpec((4, 1, D), lambda i: (0, 0, 0)),
                pl.BlockSpec((N, N), lambda i: (0, 0)),
            ],
            out_specs=pl.BlockSpec((B, S, D), lambda i: (0, 0, 0)),
        ),
        compiler_params=pltpu.CompilerParams(
            dimension_semantics=("arbitrary",)),
        cost_estimate=pl.CostEstimate(
            flops=flops, transcendentals=transcendentals,
            bytes_accessed=bytes_accessed),
    )(q, k, v, w_all, b_all, attn_bias)


# ---------------- deterministic parameter init --------------------------------
def init_params(key):
    ks = jax.random.split(key, 8)
    bound = 1.0 / math.sqrt(D)

    def linear(kw, kb):
        w = jax.random.uniform(kw, (D, D), jnp.float32, -bound, bound)  # (in,out)
        bb = jax.random.uniform(kb, (D,), jnp.float32, -bound, bound)
        return w, bb

    wq, bq = linear(ks[0], ks[1])
    wk, bk = linear(ks[2], ks[3])
    wv, bv = linear(ks[4], ks[5])
    wo, bo = linear(ks[6], ks[7])
    p = dict(wq=wq, bq=bq, wk=wk, bk=bk, wv=wv, bv=bv, wo=wo, bo=bo)
    p["w_all"] = jnp.stack([wq, wk, wv, wo], axis=0)              # (4, D, D)
    p["b_all"] = jnp.stack([bq, bk, bv, bo], axis=0)[:, None, :]  # (4, 1, D)
    return p


# ---------------- pure-JAX reference (for correctness check) ------------------
def reference(q, k, v, p):
    hi = jax.lax.Precision.HIGHEST

    def proj(x, w, bb):
        return jnp.matmul(x, w, precision=hi) + bb

    def heads(x):
        return x.reshape(B, S, H, DK).transpose(0, 2, 1, 3)

    qh = heads(proj(q, p["wq"], p["bq"]))
    kh = heads(proj(k, p["wk"], p["bk"]))
    vh = heads(proj(v, p["wv"], p["bv"]))
    scores = jnp.einsum("bhqd,bhkd->bhqk", qh, kh, precision=hi) * SCALE
    attn = jax.nn.softmax(scores, axis=-1)
    ctx = jnp.einsum("bhqk,bhkd->bhqd", attn, vh, precision=hi)
    ctx = ctx.transpose(0, 2, 1, 3).reshape(B, S, D)
    return jnp.matmul(ctx, p["wo"], precision=hi) + p["bo"]


# ---------------- main ---------------------------------------------------------
if __name__ == "__main__":
    key = jax.random.PRNGKey(0)
    kq, kk, kv, kp = jax.random.split(key, 4)
    q = jax.random.normal(kq, (B, S, D), jnp.float32)
    k = jax.random.normal(kk, (B, S, D), jnp.float32)
    v = jax.random.normal(kv, (B, S, D), jnp.float32)
    params = init_params(kp)

    out = multi_head_attention(q, k, v, params["w_all"], params["b_all"])
    out = jax.block_until_ready(out)

    ref = reference(q, k, v, params)
    np.testing.assert_allclose(np.asarray(out), np.asarray(ref),
                               rtol=2e-3, atol=2e-3)
    print("KERNEL_OK")
</pallas_src>

<mosaic_0001>
module attributes {stable_mosaic.version = 11 : i64} {
  func.func @mha_kernel(%arg0: i32, %arg1: memref<2x8x32xf32, #tpu.memory_space<vmem>>, %arg2: memref<2x8x32xf32, #tpu.memory_space<vmem>>, %arg3: memref<2x8x32xf32, #tpu.memory_space<vmem>>, %arg4: memref<4x32x32xf32, #tpu.memory_space<vmem>>, %arg5: memref<4x1x32xf32, #tpu.memory_space<vmem>>, %arg6: memref<16x16xf32, #tpu.memory_space<vmem>>, %arg7: memref<2x8x32xf32, #tpu.memory_space<vmem>>) attributes {dimension_semantics = [#tpu.dimension_semantics<arbitrary>], iteration_bounds = array<i64: 1>, scalar_prefetch = 0 : i64, scratch_operands = 0 : i64, tpu.core_type = #tpu.core_type<tc>, window_params = [{pipeline_mode = #tpu.pipeline_mode<synchronous>, transform_indices = @transform_0, window_bounds = array<i64: 2, 8, 32>}, {pipeline_mode = #tpu.pipeline_mode<synchronous>, transform_indices = @transform_1, window_bounds = array<i64: 2, 8, 32>}, {pipeline_mode = #tpu.pipeline_mode<synchronous>, transform_indices = @transform_2, window_bounds = array<i64: 2, 8, 32>}, {pipeline_mode = #tpu.pipeline_mode<synchronous>, transform_indices = @transform_3, window_bounds = array<i64: 4, 32, 32>}, {pipeline_mode = #tpu.pipeline_mode<synchronous>, transform_indices = @transform_4, window_bounds = array<i64: 4, 1, 32>}, {pipeline_mode = #tpu.pipeline_mode<synchronous>, transform_indices = @transform_5, window_bounds = array<i64: 16, 16>}, {pipeline_mode = #tpu.pipeline_mode<synchronous>, transform_indices = @transform_6, window_bounds = array<i64: 2, 8, 32>}]} {
    %c0 = arith.constant 0 : index
    %c0_0 = arith.constant 0 : index
    %c0_1 = arith.constant 0 : index
    %0 = vector.load %arg1[%c0, %c0_0, %c0_1] : memref<2x8x32xf32, #tpu.memory_space<vmem>>, vector<2x8x32xf32>
    %1 = vector.shape_cast %0 : vector<2x8x32xf32> to vector<16x32xf32>
    %c0_2 = arith.constant 0 : index
    %c0_3 = arith.constant 0 : index
    %c0_4 = arith.constant 0 : index
    %2 = vector.load %arg2[%c0_2, %c0_3, %c0_4] : memref<2x8x32xf32, #tpu.memory_space<vmem>>, vector<2x8x32xf32>
    %3 = vector.shape_cast %2 : vector<2x8x32xf32> to vector<16x32xf32>
    %c0_5 = arith.constant 0 : index
    %c0_6 = arith.constant 0 : index
    %c0_7 = arith.constant 0 : index
    %4 = vector.load %arg3[%c0_5, %c0_6, %c0_7] : memref<2x8x32xf32, #tpu.memory_space<vmem>>, vector<2x8x32xf32>
    %5 = vector.shape_cast %4 : vector<2x8x32xf32> to vector<16x32xf32>
    %c0_8 = arith.constant 0 : index
    %c0_9 = arith.constant 0 : index
    %c0_10 = arith.constant 0 : index
    %6 = vector.load %arg4[%c0_8, %c0_9, %c0_10] : memref<4x32x32xf32, #tpu.memory_space<vmem>>, vector<1x32x32xf32>
    %7 = vector.shape_cast %6 : vector<1x32x32xf32> to vector<32x32xf32>
    %cst = arith.constant dense<0.000000e+00> : vector<16x32xf32>
    %8 = tpu.matmul %1, %7, %cst {dimension_numbers = #tpu.dot_dimension_numbers<[1], [0], [0], [1], [0, 0, 1, 1], [], []>} : vector<16x32xf32>, vector<32x32xf32>, vector<16x32xf32> -> vector<16x32xf32>
    %c0_11 = arith.constant 0 : index
    %c0_12 = arith.constant 0 : index
    %c0_13 = arith.constant 0 : index
    %9 = vector.load %arg5[%c0_11, %c0_12, %c0_13] : memref<4x1x32xf32, #tpu.memory_space<vmem>>, vector<1x1x32xf32>
    %10 = vector.shape_cast %9 : vector<1x1x32xf32> to vector<1x32xf32>
    %11 = vector.broadcast %10 : vector<1x32xf32> to vector<16x32xf32>
    %12 = arith.addf %8, %11 : vector<16x32xf32>
    %c1 = arith.constant 1 : index
    %c0_14 = arith.constant 0 : index
    %c0_15 = arith.constant 0 : index
    %13 = vector.load %arg4[%c1, %c0_14, %c0_15] : memref<4x32x32xf32, #tpu.memory_space<vmem>>, vector<1x32x32xf32>
    %14 = vector.shape_cast %13 : vector<1x32x32xf32> to vector<32x32xf32>
    %cst_16 = arith.constant dense<0.000000e+00> : vector<16x32xf32>
    %15 = tpu.matmul %3, %14, %cst_16 {dimension_numbers = #tpu.dot_dimension_numbers<[1], [0], [0], [1], [0, 0, 1, 1], [], []>} : vector<16x32xf32>, vector<32x32xf32>, vector<16x32xf32> -> vector<16x32xf32>
    %c1_17 = arith.constant 1 : index
    %c0_18 = arith.constant 0 : index
    %c0_19 = arith.constant 0 : index
    %16 = vector.load %arg5[%c1_17, %c0_18, %c0_19] : memref<4x1x32xf32, #tpu.memory_space<vmem>>, vector<1x1x32xf32>
    %17 = vector.shape_cast %16 : vector<1x1x32xf32> to vector<1x32xf32>
    %18 = vector.broadcast %17 : vector<1x32xf32> to vector<16x32xf32>
    %19 = arith.addf %15, %18 : vector<16x32xf32>
    %c2 = arith.constant 2 : index
    %c0_20 = arith.constant 0 : index
    %c0_21 = arith.constant 0 : index
    %20 = vector.load %arg4[%c2, %c0_20, %c0_21] : memref<4x32x32xf32, #tpu.memory_space<vmem>>, vector<1x32x32xf32>
    %21 = vector.shape_cast %20 : vector<1x32x32xf32> to vector<32x32xf32>
    %cst_22 = arith.constant dense<0.000000e+00> : vector<16x32xf32>
    %22 = tpu.matmul %5, %21, %cst_22 {dimension_numbers = #tpu.dot_dimension_numbers<[1], [0], [0], [1], [0, 0, 1, 1], [], []>} : vector<16x32xf32>, vector<32x32xf32>, vector<16x32xf32> -> vector<16x32xf32>
    %c2_23 = arith.constant 2 : index
    %c0_24 = arith.constant 0 : index
    %c0_25 = arith.constant 0 : index
    %23 = vector.load %arg5[%c2_23, %c0_24, %c0_25] : memref<4x1x32xf32, #tpu.memory_space<vmem>>, vector<1x1x32xf32>
    %24 = vector.shape_cast %23 : vector<1x1x32xf32> to vector<1x32xf32>
    %25 = vector.broadcast %24 : vector<1x32xf32> to vector<16x32xf32>
    %26 = arith.addf %22, %25 : vector<16x32xf32>
    %27 = tpu.transpose %12, [1, 0] : vector<16x32xf32> -> vector<32x16xf32>
    %28 = vector.shape_cast %27 : vector<32x16xf32> to vector<4x8x16xf32>
    %29 = tpu.transpose %28, [0, 2, 1] : vector<4x8x16xf32> -> vector<4x16x8xf32>
    %30 = tpu.transpose %19, [1, 0] : vector<16x32xf32> -> vector<32x16xf32>
    %31 = vector.shape_cast %30 : vector<32x16xf32> to vector<4x8x16xf32>
    %32 = tpu.transpose %31, [0, 2, 1] : vector<4x8x16xf32> -> vector<4x16x8xf32>
    %33 = tpu.transpose %26, [1, 0] : vector<16x32xf32> -> vector<32x16xf32>
    %34 = vector.shape_cast %33 : vector<32x16xf32> to vector<4x8x16xf32>
    %35 = tpu.transpose %34, [0, 2, 1] : vector<4x8x16xf32> -> vector<4x16x8xf32>
    "tpu.trace_start"() <{level = 10 : i32, message = "hqd,hkd->hqk"}> : () -> ()
    %cst_26 = arith.constant dense<0.000000e+00> : vector<4x16x16xf32>
    %36 = tpu.matmul %29, %32, %cst_26 {dimension_numbers = #tpu.dot_dimension_numbers<[2], [2], [1], [1], [0, 0, 0, 1, 1, 1], [0], [0]>} : vector<4x16x8xf32>, vector<4x16x8xf32>, vector<4x16x16xf32> -> vector<4x16x16xf32>
    "tpu.trace_stop"() : () -> ()
    %cst_27 = arith.constant 0.353553385 : f32
    %37 = vector.broadcast %cst_27 : f32 to vector<4x16x16xf32>
    %38 = arith.mulf %36, %37 : vector<4x16x16xf32>
    %c0_28 = arith.constant 0 : index
    %c0_29 = arith.constant 0 : index
    %39 = vector.load %arg6[%c0_28, %c0_29] : memref<16x16xf32, #tpu.memory_space<vmem>>, vector<16x16xf32>
    %40 = vector.shape_cast %39 : vector<16x16xf32> to vector<1x16x16xf32>
    %41 = vector.broadcast %40 : vector<1x16x16xf32> to vector<4x16x16xf32>
    %42 = arith.addf %38, %41 : vector<4x16x16xf32>
    %cst_30 = arith.constant dense<0xFF800000> : vector<4x16xf32>
    %43 = vector.multi_reduction <maximumf>, %42, %cst_30 [2] : vector<4x16x16xf32> to vector<4x16xf32>
    %44 = vector.shape_cast %43 : vector<4x16xf32> to vector<4x16x1xf32>
    %45 = vector.broadcast %44 : vector<4x16x1xf32> to vector<4x16x16xf32>
    %46 = arith.subf %42, %45 : vector<4x16x16xf32>
    %47 = math.exp %46 : vector<4x16x16xf32>
    %cst_31 = arith.constant dense<0.000000e+00> : vector<4x16xf32>
    %48 = vector.multi_reduction <add>, %47, %cst_31 [2] : vector<4x16x16xf32> to vector<4x16xf32>
    %49 = vector.shape_cast %48 : vector<4x16xf32> to vector<4x16x1xf32>
    %50 = tpu.reciprocal %49 {approx = true} : vector<4x16x1xf32> -> vector<4x16x1xf32>
    %51 = vector.broadcast %50 : vector<4x16x1xf32> to vector<4x16x16xf32>
    %52 = arith.mulf %47, %51 : vector<4x16x16xf32>
    "tpu.trace_start"() <{level = 10 : i32, message = "hqk,hkd->hqd"}> : () -> ()
    %cst_32 = arith.constant dense<0.000000e+00> : vector<4x16x8xf32>
    %53 = tpu.matmul %52, %35, %cst_32 {dimension_numbers = #tpu.dot_dimension_numbers<[2], [1], [1], [2], [0, 0, 0, 1, 1, 2], [0], [0]>} : vector<4x16x16xf32>, vector<4x16x8xf32>, vector<4x16x8xf32> -> vector<4x16x8xf32>
    "tpu.trace_stop"() : () -> ()
    %54 = tpu.transpose %53, [0, 2, 1] : vector<4x16x8xf32> -> vector<4x8x16xf32>
    %55 = vector.shape_cast %54 : vector<4x8x16xf32> to vector<32x16xf32>
    %56 = tpu.transpose %55, [1, 0] : vector<32x16xf32> -> vector<16x32xf32>
    %c3 = arith.constant 3 : index
    %c0_33 = arith.constant 0 : index
    %c0_34 = arith.constant 0 : index
    %57 = vector.load %arg4[%c3, %c0_33, %c0_34] : memref<4x32x32xf32, #tpu.memory_space<vmem>>, vector<1x32x32xf32>
    %58 = vector.shape_cast %57 : vector<1x32x32xf32> to vector<32x32xf32>
    %cst_35 = arith.constant dense<0.000000e+00> : vector<16x32xf32>
    %59 = tpu.matmul %56, %58, %cst_35 {dimension_numbers = #tpu.dot_dimension_numbers<[1], [0], [0], [1], [0, 0, 1, 1], [], []>} : vector<16x32xf32>, vector<32x32xf32>, vector<16x32xf32> -> vector<16x32xf32>
    %c3_36 = arith.constant 3 : index
    %c0_37 = arith.constant 0 : index
    %c0_38 = arith.constant 0 : index
    %60 = vector.load %arg5[%c3_36, %c0_37, %c0_38] : memref<4x1x32xf32, #tpu.memory_space<vmem>>, vector<1x1x32xf32>
    %61 = vector.shape_cast %60 : vector<1x1x32xf32> to vector<1x32xf32>
    %62 = vector.broadcast %61 : vector<1x32xf32> to vector<16x32xf32>
    %63 = arith.addf %59, %62 : vector<16x32xf32>
    %64 = vector.shape_cast %63 : vector<16x32xf32> to vector<2x8x32xf32>
    %c0_39 = arith.constant 0 : index
    %c0_40 = arith.constant 0 : index
    %c0_41 = arith.constant 0 : index
    %65 = vector.load %arg7[%c0_39, %c0_40, %c0_41] : memref<2x8x32xf32, #tpu.memory_space<vmem>>, vector<2x8x32xf32>
    tpu.vector_store %arg7[%c0_39, %c0_40, %c0_41], %64 {strides = array<i32>} : memref<2x8x32xf32, #tpu.memory_space<vmem>>, vector<2x8x32xf32>,
    return
  }
  func.func @transform_0(%arg0: i32) -> (i32, i32, i32) {
    %c0_i32 = arith.constant 0 : i32
    %c0_i32_0 = arith.constant 0 : i32
    %c0_i32_1 = arith.constant 0 : i32
    %c0_i32_2 = arith.constant 0 : i32
    return %c0_i32, %c0_i32_0, %c0_i32_1 : i32, i32, i32
  }
  func.func @transform_1(%arg0: i32) -> (i32, i32, i32) {
    %c0_i32 = arith.constant 0 : i32
    %c0_i32_0 = arith.constant 0 : i32
    %c0_i32_1 = arith.constant 0 : i32
    %c0_i32_2 = arith.constant 0 : i32
    return %c0_i32, %c0_i32_0, %c0_i32_1 : i32, i32, i32
  }
  func.func @transform_2(%arg0: i32) -> (i32, i32, i32) {
    %c0_i32 = arith.constant 0 : i32
    %c0_i32_0 = arith.constant 0 : i32
    %c0_i32_1 = arith.constant 0 : i32
    %c0_i32_2 = arith.constant 0 : i32
    return %c0_i32, %c0_i32_0, %c0_i32_1 : i32, i32, i32
  }
  func.func @transform_3(%arg0: i32) -> (i32, i32, i32) {
    %c0_i32 = arith.constant 0 : i32
    %c0_i32_0 = arith.constant 0 : i32
    %c0_i32_1 = arith.constant 0 : i32
    %c0_i32_2 = arith.constant 0 : i32
    return %c0_i32, %c0_i32_0, %c0_i32_1 : i32, i32, i32
  }
  func.func @transform_4(%arg0: i32) -> (i32, i32, i32) {
    %c0_i32 = arith.constant 0 : i32
    %c0_i32_0 = arith.constant 0 : i32
    %c0_i32_1 = arith.constant 0 : i32
    %c0_i32_2 = arith.constant 0 : i32
    return %c0_i32, %c0_i32_0, %c0_i32_1 : i32, i32, i32
  }
  func.func @transform_5(%arg0: i32) -> (i32, i32) {
    %c0_i32 = arith.constant 0 : i32
    %c0_i32_0 = arith.constant 0 : i32
    %c0_i32_1 = arith.constant 0 : i32
    return %c0_i32, %c0_i32_0 : i32, i32
  }
  func.func @transform_6(%arg0: i32) -> (i32, i32, i32) {
    %c0_i32 = arith.constant 0 : i32
    %c0_i32_0 = arith.constant 0 : i32
    %c0_i32_1 = arith.constant 0 : i32
    %c0_i32_2 = arith.constant 0 : i32
    return %c0_i32, %c0_i32_0, %c0_i32_1 : i32, i32, i32
  }
}

</mosaic_0001>

<bundles_post_ra>
// kernel: tpu_custom_call.1
= control target key start
LH: loop header
LB: loop body
LE: loop exit
PB: predicated region body
PF: predicated region fallthrough
CT: control target
= control target key end

     0   :  { %11 = vsyncpa [#allocation3], 0  ;;  %s2139_s0 = inlined_call_operand.hbm [shape: f32[2,8,32], index: 0, kind: input, shape index: {}]   ;;  %s2140_s1 = inlined_call_operand.hbm [shape: f32[2,8,32], index: 1, kind: input, shape index: {}]   ;;  %s2141_s2 = inlined_call_operand.hbm [shape: f32[2,8,32], index: 2, kind: input, shape index: {}]   ;;  %s2142_s3 = inlined_call_operand.hbm [shape: f32[4,32,32], index: 3, kind: input, shape index: {}]   ;;  %s2143_s4 = inlined_call_operand.vmem [shape: f32[4,1,32], index: 4, kind: input, shape index: {}]   ;;  %s2144_s5 = inlined_call_operand.hbm [shape: f32[16,16], index: 5, kind: input, shape index: {}]   ;;  %s2145_s6 = inlined_call_operand.hbm [shape: f32[2,8,32], index: 6, kind: output, shape index: {}]  }
   0x1   :  { %12 = vsyncpa [#allocation6], 0 }
   0x2   :  { %13 = vsyncpa [#allocation9], 0 }
   0x3   :  { %14 = vsyncpa [#allocation4], 0  ;;  %s1982_s21 = smov [#allocation5]   ;;  %s1983_s23 = smov [#allocation8]  }
   0x4   :  { %s32_s22 = sshll.u32 %s1982_s21, 4  ;;  %s56_s24 = sshll.u32 %s1983_s23, 4  ;;  %s33_s22 = int_to_ptr.vmem [resolvable:$true] %s32_s22  ;;  %s57_s24 = int_to_ptr.vmem [resolvable:$true] %s56_s24 }
   0x5   :  { %s1862_s25 = scalar_lea.vmem %s33_s22, 256  ;;  %p1867_p1 = scmp.lt.s32.totalorder %s33_s22, %s33_s22 }
   0x6   :  { %p1863_p0 = scmp.ne.s32.totalorder %s33_s22, %s1862_s25  ;;  %p1868_p2 = scmp.lt.s32.totalorder %s1862_s25, %s1862_s25 }
   0x8   :  { %p1869_p3 = por %p1868_p2, %p1867_p1 }
   0xa   :  { %p1870_p4 = pnand %p1869_p3, %p1863_p0 }
   0xc   :  { %1873 = shalt.err (!%p1870_p4)
}
   0xd   :  { %s1984_s26 = smov 128   ;;  %s1985_s27 = smov 8  }
   0xe   :  { %38 = dma.hbm_to_vmem [thread:$0]  %s2140_s1, 256, %s33_s22, [#allocation6], %s1984_s26, %s1984_s26, %s1985_s27  }
   0xf   :  { %s1882_s30 = scalar_lea.vmem %s57_s24, 2048  ;;  %p1887_p6 = scmp.lt.s32.totalorder %s57_s24, %s57_s24 }
  0x10   :  { %p1883_p5 = scmp.ne.s32.totalorder %s57_s24, %s1882_s30  ;;  %p1888_p7 = scmp.lt.s32.totalorder %s1882_s30, %s1882_s30 }
  0x12   :  { %p1889_p8 = por %p1888_p7, %p1887_p6 }
  0x14   :  { %p1890_p9 = pnand %p1889_p8, %p1883_p5 }
  0x16   :  { %1893 = shalt.err (!%p1890_p9)
}
  0x17   :  { %62 = dma.hbm_to_vmem [thread:$0]  %s2142_s3, 2048, %s57_s24, [#allocation9], %s1984_s26, %s1984_s26, %s1985_s27  }
  0x18   :  { %s1986_s9 = smov [#allocation2]   ;;  %s1987_s11 = smov [#allocation7]  }
  0x19   :  { %s20_s10 = sshll.u32 %s1986_s9, 4  ;;  %s44_s12 = sshll.u32 %s1987_s11, 4  ;;  %s21_s10 = int_to_ptr.vmem [resolvable:$true] %s20_s10  ;;  %s45_s12 = int_to_ptr.vmem [resolvable:$true] %s44_s12 }
  0x1a   :  { %s1902_s1 = scalar_lea.vmem %s21_s10, 256  ;;  %p1907_p11 = scmp.lt.s32.totalorder %s21_s10, %s21_s10 }
  0x1b   :  { %p1903_p10 = scmp.ne.s32.totalorder %s21_s10, %s1902_s1  ;;  %p1908_p12 = scmp.lt.s32.totalorder %s1902_s1, %s1902_s1 }
  0x1d   :  { %p1909_p13 = por %p1908_p12, %p1907_p11 }
  0x1f   :  { %p1910_p0 = pnand %p1909_p13, %p1903_p10 }
  0x21   :  { %1913 = shalt.err (!%p1910_p0)
}
  0x22   :  { %26 = dma.hbm_to_vmem [thread:$0]  %s2139_s0, 256, %s21_s10, [#allocation3], %s1984_s26, %s1984_s26, %s1985_s27  }
  0x23   :  { %s1922_s3 = scalar_lea.vmem %s45_s12, 256  ;;  %p1927_p2 = scmp.lt.s32.totalorder %s45_s12, %s45_s12 }
  0x24   :  { %p1923_p1 = scmp.ne.s32.totalorder %s45_s12, %s1922_s3  ;;  %p1928_p3 = scmp.lt.s32.totalorder %s1922_s3, %s1922_s3 }
  0x26   :  { %p1929_p4 = por %p1928_p3, %p1927_p2 }
  0x28   :  { %p1930_p5 = pnand %p1929_p4, %p1923_p1 }
  0x2a   :  { %1933 = shalt.err (!%p1930_p5)
}
  0x2b   :  { %50 = dma.hbm_to_vmem [thread:$0]  %s2141_s2, 256, %s45_s12, [#allocation6], %s1984_s26, %s1984_s26, %s1985_s27  }
  0x2c   :  { %s1988_s17 = smov [#allocation10]  }
  0x2d   :  { %s70_s18 = sshll.u32 %s1988_s17, 4  ;;  %s71_s18 = int_to_ptr.vmem [resolvable:$true] %s70_s18 }
  0x2e   :  { %s1942_s19 = scalar_lea.vmem %s71_s18, 256  ;;  %p1947_p7 = scmp.lt.s32.totalorder %s71_s18, %s71_s18 }
  0x2f   :  { %p1943_p6 = scmp.ne.s32.totalorder %s71_s18, %s1942_s19  ;;  %p1948_p8 = scmp.lt.s32.totalorder %s1942_s19, %s1942_s19 }
  0x31   :  { %p1949_p9 = por %p1948_p8, %p1947_p7 }
  0x33   :  { %p1950_p10 = pnand %p1949_p9, %p1943_p6 }
  0x35   :  { %1953 = shalt.err (!%p1950_p10)
}
  0x36   :  { %76 = dma.hbm_to_vmem [thread:$0]  %s2144_s5, 256, %s71_s18, [#allocation9], %s1984_s26, %s1984_s26, %s1985_s27  }
  0x37   :  { %1974 = dma.done.wait [#allocation3], 256  }
  0x38   :  { %1975 = vsyncadd [#allocation3], 4294967040 }
  0x39   :  { %1976 = dma.done.wait [#allocation6], 512  }
  0x3a   :  { %1977 = vsyncadd [#allocation6], 4294966784 }
  0x3b   :  { %1978 = dma.done.wait [#allocation9], 2304  }
  0x3c   :  { %1979 = vsyncadd [#allocation9], 4294964992  ;;  %vm109_vm0 = vcmask 261120   ;;  %v101_v0 = vld [vmem:[#allocation8 + $0x18] sm:$0xff]  ;;  %v100_v1 = vld [vmem:[#allocation8 + $0x10] sm:$0xff]  ;;  %vm603_vm1 = vcmask 64512  }
  0x3d   :  { %1729 = vmatprep.subr.mxu0 %v101_v0  ;;  %v92_v2 = vld [vmem:[#allocation2] sm:$0xff]  ;;  %v99_v3 = vld [vmem:[#allocation8 + $0x8] sm:$0xff]  ;;  %v195_v4 = vld [vmem:[#allocation8 + $0x38] sm:$0xff]  ;;  %vm946_vm2 = vcmask 130048   ;;  %s1989_s29 = smov [#allocation11]  }
  0x3e   :  { %1730 = vmatpush3.msra.mxu0 %v101_v0  ;;  %1737 = vmatprep.mubr.msk.f32.mxu0 %vm109_vm0, %v92_v2  ;;  %v194_v5 = vld [vmem:[#allocation8 + $0x30] sm:$0xff]  ;;  %v98_v6 = vld [vmem:[#allocation8] sm:$0xff]  ;;  %v193_v7 = vld [vmem:[#allocation8 + $0x28] sm:$0xff]  ;;  %s1632_s30 = sshll.u32 %s1989_s29, 4  ;;  %s1633_s30 = int_to_ptr.vmem [resolvable:$true] %s1632_s30 }
  0x3f   :  { %1731 = vmatprep.subr.mxu0 %v100_v1  ;;  %1740 = vmatprep.subr.mxu1 %v195_v4  ;;  %v93_v8 = vld [vmem:[#allocation2 + $0x8] sm:$0xff]  ;;  %v192_v9 = vld [vmem:[#allocation8 + $0x20] sm:$0xff]  ;;  %v95_v11 = vld [vmem:[#allocation5 + $0x8] sm:$0xff]  ;;  %s1954_s7 = scalar_lea.vmem %s1633_s30, 256  ;;  %p1959_p12 = scmp.lt.s32.totalorder %s1633_s30, %s1633_s30 }
  0x40   :  { %1732 = vmatpush3.msra.mxu0 %v100_v1  ;;  %1741 = vmatpush3.msra.mxu1 %v195_v4  ;;  %v94_v10 = vld [vmem:[#allocation5] sm:$0xff]  ;;  %v1646_v13 = vld [vmem:[%s2143_s4] ss:$0 sm:$0xff]  ;;  %v1650_v18 = vld [vmem:[%s2143_s4 + $0x1] ss:$0 sm:$0xff]  ;;  %p1955_p11 = scmp.ne.s32.totalorder %s1633_s30, %s1954_s7  ;;  %p1960_p13 = scmp.lt.s32.totalorder %s1954_s7, %s1954_s7 }
  0x41   :  { %1733 = vmatprep.subr.mxu0 %v99_v3  ;;  %1742 = vmatprep.subr.mxu1 %v194_v5  ;;  %v289_v38 = vld [vmem:[#allocation8 + $0x58] sm:$0xff]  ;;  %v288_v39 = vld [vmem:[#allocation8 + $0x50] sm:$0xff]  ;;  %v287_v40 = vld [vmem:[#allocation8 + $0x48] sm:$0xff] }
  0x42   :  { %1734 = vmatpush3.msra.mxu0 %v99_v3  ;;  %1743 = vmatpush3.msra.mxu1 %v194_v5  ;;  %v286_v41 = vld [vmem:[#allocation8 + $0x40] sm:$0xff]  ;;  %v96_v42 = vld [vmem:[#allocation7] sm:$0xff]  ;;  %v97_v43 = vld [vmem:[#allocation7 + $0x8] sm:$0xff]  ;;  %p1961_p0 = por %p1960_p13, %p1959_p12 }
  0x43   :  { %1735 = vmatprep.subr.mxu0 %v98_v6  ;;  %1744 = vmatprep.subr.mxu1 %v193_v7  ;;  %v937_v45 = vld [vmem:[#allocation10 + $0x8] sm:$0xff]  ;;  %v936_v48 = vld [vmem:[#allocation10] sm:$0xff] }
  0x44   :  { %1736 = vmatpush3.msra.mxu0 %v98_v6  ;;  %1745 = vmatpush3.msra.mxu1 %v193_v7  ;;  %p1962_p1 = pnand %p1961_p0, %p1955_p11 }
  0x45   :  { %1738 = vmatmul.mubr.msk.f32.vlgmr.msra.gmra.mxu0 %vm109_vm0, %v93_v8  ;;  %1746 = vmatprep.subr.mxu1 %v192_v9 }
  0x46   :  { %1747 = vmatpush3.msra.mxu1 %v192_v9  ;;  %1748 = vmatprep.mubr.msk.f32.mxu1 %vm109_vm0, %v94_v10 }
  0x47   :  { %1749 = vmatmul.mubr.msk.f32.vlgmr.msra.gmra.mxu1 %vm109_vm0, %v95_v11  ;;  %1751 = vmatprep.subr.mxu0 %v289_v38 }
  0x48   :  { %1752 = vmatpush3.msra.mxu0 %v289_v38  ;;  %1759 = vmatprep.mubr.msk.f32.mxu0 %vm109_vm0, %v96_v42 }
  0x49   :  { %1753 = vmatprep.subr.mxu0 %v288_v39 }
  0x4a   :  { %1754 = vmatpush3.msra.mxu0 %v288_v39 }
  0x4b   :  { %1755 = vmatprep.subr.mxu0 %v287_v40 }
  0x4c   :  { %1756 = vmatpush3.msra.mxu0 %v287_v40 }
  0x4d   :  { %1757 = vmatprep.subr.mxu0 %v286_v41 }
  0x4e   :  { %1758 = vmatpush3.msra.mxu0 %v286_v41 }
  0x4f   :  { %1760 = vmatmul.mubr.msk.f32.vlgmr.msra.gmra.mxu0 %vm109_vm0, %v97_v43 }
 0x105   :  { %v1739_v12 = vpop.f32.mrf.mxu0 }
 0x106   :  { %v188_v16 = vadd.f32 %v1739_v12, %v1646_v13 }
 0x107   :  { %v182_v14 = vpop.f32.mrf.mxu0  ;;  %v1750_v17 = vpop.f32.mrf.mxu1 }
 0x108   :  { %v183_v15 = vadd.f32 %v1646_v13, %v182_v14  ;;  %v282_v23 = vadd.f32 %v1750_v17, %v1650_v18 }
 0x109   :  { %v276_v19 = vpop.f32.mrf.mxu1 }
 0x10a   :  { %379 = vxpose.xlu0.b32.start [1/2] (short) (narrow) %v183_v15, 32  ;;  %v277_v21 = vadd.f32 %v1650_v18, %v276_v19 }
 0x10e   :  { %380 = vxpose.xlu0.b32.end [2/2] (short) (narrow) %v188_v16, 32 }
 0x186   :  { %v395_v20 = vpop.trf.xlu0 }
 0x187   :  { %411 = vxpose.xlu1.b32.start.end [1/1] (short) (narrow) %v395_v20, 16 }
 0x18a   :  { %v396_v22 = vpop.trf.xlu0 }
 0x18b   :  { %443 = vxpose.xlu0.b32.start.end [1/1] (short) (narrow) %v396_v22, 16 }
 0x18c   :  { %539 = vxpose.xlu1.b32.start [1/2] (short) (narrow) %v277_v21, 32 }
 0x18e   :  { %v397_v24 = vpop.trf.xlu0 }
 0x190   :  { %540 = vxpose.xlu1.b32.end [2/2] (short) (narrow) %v282_v23, 32 }
 0x192   :  { %v398_v25 = vpop.trf.xlu0 }
 0x193   :  { %507 = vxpose.xlu0.b32.start.end [1/1] (short) (narrow) %v398_v25, 16 }
 0x199   :  { %475 = vxpose.xlu1.b32.start.end [1/1] (short) (narrow) %v397_v24, 16 }
 0x203   :  { %v427_v26 = vpop.trf.xlu1 }
 0x204   :  { %1764 = vmatprep.mubr.msk.f32.mxu1 %vm603_vm1, %v427_v26 }
 0x207   :  { %v428_v27 = vpop.trf.xlu1  ;;  %v459_v28 = vpop.trf.xlu0 }
 0x20b   :  { %v555_v29 = vpop.trf.xlu1  ;;  %v460_v31 = vpop.trf.xlu0 }
 0x20c   :  { %1762 = vmatprep.subr.mxu1 %v555_v29 }
 0x20d   :  { %1763 = vmatpush3.msra.mxu1 %v555_v29 }
 0x20e   :  { %1765 = vmatmul.mubr.msk.f32.vlgmr.msra.gmra.mxu1 %vm603_vm1, %v428_v27 }
 0x20f   :  { %v556_v30 = vpop.trf.xlu1  ;;  %1769 = vmatprep.mubr.msk.f32.mxu1 %vm603_vm1, %v459_v28  ;;  %v523_v35 = vpop.trf.xlu0 }
 0x210   :  { %1767 = vmatprep.subr.mxu1 %v556_v30 }
 0x211   :  { %1768 = vmatpush3.msra.mxu1 %v556_v30 }
 0x212   :  { %1770 = vmatmul.mubr.msk.f32.vlgmr.msra.gmra.mxu1 %vm603_vm1, %v460_v31 }
 0x213   :  { %v557_v32 = vpop.trf.xlu1  ;;  %v524_v37 = vpop.trf.xlu0 }
 0x214   :  { %1772 = vmatprep.subr.mxu1 %v557_v32 }
 0x215   :  { %1773 = vmatpush3.msra.mxu1 %v557_v32 }
 0x217   :  { %v558_v33 = vpop.trf.xlu1 }
 0x218   :  { %1777 = vmatprep.subr.mxu1 %v558_v33 }
 0x21b   :  { %v491_v34 = vpop.trf.xlu1 }
 0x21c   :  { %1774 = vmatprep.mubr.msk.f32.mxu1 %vm603_vm1, %v491_v34 }
 0x21f   :  { %v492_v36 = vpop.trf.xlu1 }
 0x220   :  { %1775 = vmatmul.mubr.msk.f32.vlgmr.msra.gmra.mxu1 %vm603_vm1, %v492_v36 }
 0x221   :  { %1778 = vmatpush3.msra.mxu1 %v558_v33  ;;  %1779 = vmatprep.mubr.msk.f32.mxu1 %vm603_vm1, %v523_v35 }
 0x224   :  { %1780 = vmatmul.mubr.msk.f32.vlgmr.msra.gmra.mxu1 %vm603_vm1, %v524_v37 }
 0x2ce   :  { %v1766_v44 = vpop.f32.mrf.mxu1 }
 0x2cf   :  { %v929_v46 = vmul.f32 0.35355338, %v1766_v44 }
 0x2d0   :  { %v676_v47 = vpop.f32.mrf.mxu1 }
 0x2d1   :  { %v928_v49 = vmul.f32 0.35355338, %v676_v47  ;;  %v939_v50 = vadd.f32 %v937_v45, %v929_v46 }
 0x2d2   :  { %v1771_v51 = vpop.f32.mrf.mxu1 }
 0x2d3   :  { %v931_v52 = vmul.f32 0.35355338, %v1771_v51  ;;  %v950_v53 = vsel %vm946_vm2, %v939_v50, -inf  ;;  %v938_v54 = vadd.f32 %v936_v48, %v928_v49 }
 0x2d4   :  { %951 = vmax.xlane.f32.xlu1 %v950_v53  ;;  %v757_v55 = vpop.f32.mrf.mxu1 }
 0x2d5   :  { %v947_v56 = vsel %vm946_vm2, %v938_v54, -inf  ;;  %v930_v57 = vmul.f32 0.35355338, %v757_v55  ;;  %v941_v58 = vadd.f32 %v937_v45, %v931_v52  ;;  %v1654_v55 = vld [vmem:[%s2143_s4 + $0x2] ss:$0 sm:$0xff] }
 0x2d6   :  { %948 = vmax.xlane.f32.xlu0 %v947_v56 }
 0x2d7   :  { %v956_v59 = vsel %vm946_vm2, %v941_v58, -inf  ;;  %v940_v60 = vadd.f32 %v936_v48, %v930_v57 }
 0x2d8   :  { %957 = vmax.xlane.f32.xlu1 %v956_v59 }
 0x2d9   :  { %v953_v61 = vsel %vm946_vm2, %v940_v60, -inf }
 0x2dc   :  { %954 = vmax.xlane.f32.xlu1 %v953_v61 }
 0x2e0   :  { %v1776_v62 = vpop.f32.mrf.mxu1 }
 0x2e1   :  { %v933_v63 = vmul.f32 0.35355338, %v1776_v62 }
 0x2e2   :  { %v838_v0 = vpop.f32.mrf.mxu1 }
 0x2e3   :  { %v932_v1 = vmul.f32 0.35355338, %v838_v0  ;;  %v943_v2 = vadd.f32 %v937_v45, %v933_v63 }
 0x2e4   :  { %v1781_v3 = vpop.f32.mrf.mxu1 }
 0x2e5   :  { %v935_v4 = vmul.f32 0.35355338, %v1781_v3  ;;  %v962_v5 = vsel %vm946_vm2, %v943_v2, -inf  ;;  %v942_v6 = vadd.f32 %v936_v48, %v932_v1 }
 0x2e6   :  { %963 = vmax.xlane.f32.xlu1 %v962_v5  ;;  %v919_v7 = vpop.f32.mrf.mxu1 }
 0x2e7   :  { %v934_v8 = vmul.f32 0.35355338, %v919_v7  ;;  %v959_v9 = vsel %vm946_vm2, %v942_v6, -inf  ;;  %v945_v10 = vadd.f32 %v937_v45, %v935_v4 }
 0x2e8   :  { %960 = vmax.xlane.f32.xlu0 %v959_v9 }
 0x2e9   :  { %v968_v11 = vsel %vm946_vm2, %v945_v10, -inf  ;;  %v944_v12 = vadd.f32 %v936_v48, %v934_v8 }
 0x2ea   :  { %969 = vmax.xlane.f32.xlu1 %v968_v11 }
 0x2eb   :  { %v965_v13 = vsel %vm946_vm2, %v944_v12, -inf }
 0x2ec   :  { %966 = vmax.xlane.f32.xlu0 %v965_v13 }
 0x35d   :  { %v952_v14 = vpop.xlane.xlu1 %951 }
 0x35e   :  { %v972_v15 = vsub.f32 %v939_v50, %v952_v14 }
 0x35f   :  { %v949_v16 = vpop.xlane.xlu0 %948 }
 0x360   :  { %v981_v17 = vmul.f32 1.442695, %v972_v15  ;;  %v971_v18 = vsub.f32 %v938_v54, %v949_v16  ;;  %v1761_v54 = vpop.f32.mrf.mxu0 }
 0x361   :  { %v958_v19 = vpop.xlane.xlu1 %957 }
 0x362   :  { %1822 = vpow2.f32 %v981_v17  ;;  %v979_v20 = vmul.f32 1.442695, %v971_v18  ;;  %v974_v21 = vsub.f32 %v941_v58, %v958_v19  ;;  %v370_v56 = vpop.f32.mrf.mxu0  ;;  %v376_v58 = vadd.f32 %v1761_v54, %v1654_v55 }
 0x363   :  { %v371_v57 = vadd.f32 %v1654_v55, %v370_v56 }
 0x364   :  { %1824 = vpow2.f32 %v979_v20  ;;  %v985_v22 = vmul.f32 1.442695, %v974_v21 }
 0x365   :  { %v955_v23 = vpop.xlane.xlu1 %954 }
 0x366   :  { %1826 = vpow2.f32 %v985_v22  ;;  %v973_v24 = vsub.f32 %v940_v60, %v955_v23 }
 0x368   :  { %v983_v25 = vmul.f32 1.442695, %v973_v24 }
 0x36a   :  { %1828 = vpow2.f32 %v983_v25 }
 0x36f   :  { %v2083_v26 = vpop.eup %1822  ;;  %v964_v27 = vpop.xlane.xlu1 %963 }
 0x370   :  { %v976_v28 = vsub.f32 %v943_v2, %v964_v27  ;;  %v998_v29 = vsel %vm946_vm2, %v2083_v26, 0.0 }
 0x371   :  { %v1825_v30 = vpop.eup %1824  ;;  %999 = vadd.xlane.f32.xlu1 %v998_v29  ;;  %v961_v31 = vpop.xlane.xlu0 %960 }
 0x372   :  { %v989_v32 = vmul.f32 1.442695, %v976_v28  ;;  %v975_v33 = vsub.f32 %v942_v6, %v961_v31  ;;  %v995_v34 = vsel %vm946_vm2, %v1825_v30, 0.0  ;;  %v1534_v31 = vld [vmem:[#allocation8 + $0x70] sm:$0xff] }
 0x373   :  { %v2088_v35 = vpop.eup %1826  ;;  %v970_v36 = vpop.xlane.xlu1 %969  ;;  %996 = vadd.xlane.f32.xlu0 %v995_v34  ;;  %v1532_v34 = vld [vmem:[#allocation8 + $0x60] sm:$0xff] }
 0x374   :  { %1830 = vpow2.f32 %v989_v32  ;;  %v987_v37 = vmul.f32 1.442695, %v975_v33  ;;  %v978_v38 = vsub.f32 %v945_v10, %v970_v36  ;;  %v1004_v39 = vsel %vm946_vm2, %v2088_v35, 0.0  ;;  %v1533_v33 = vld [vmem:[#allocation8 + $0x68] sm:$0xff] }
 0x375   :  { %1005 = vadd.xlane.f32.xlu1 %v1004_v39  ;;  %v967_v40 = vpop.xlane.xlu0 %966 }
 0x376   :  { %1832 = vpow2.f32 %v987_v37  ;;  %v993_v41 = vmul.f32 1.442695, %v978_v38  ;;  %v977_v42 = vsub.f32 %v944_v12, %v967_v40 }
 0x377   :  { %v1829_v43 = vpop.eup %1828 }
 0x378   :  { %1834 = vpow2.f32 %v993_v41  ;;  %v991_v44 = vmul.f32 1.442695, %v977_v42  ;;  %v1001_v45 = vsel %vm946_vm2, %v1829_v43, 0.0  ;;  %v1678_v41 = vld [vmem:[%s2143_s4 + $0x3] ss:$0 sm:$0xff] }
 0x379   :  { %1002 = vadd.xlane.f32.xlu0 %v1001_v45 }
 0x37a   :  { %1836 = vpow2.f32 %v991_v44 }
 0x381   :  { %v2093_v46 = vpop.eup %1830 }
 0x382   :  { %v1010_v47 = vsel %vm946_vm2, %v2093_v46, 0.0 }
 0x383   :  { %v1833_v48 = vpop.eup %1832  ;;  %1011 = vadd.xlane.f32.xlu1 %v1010_v47 }
 0x384   :  { %v1007_v49 = vsel %vm946_vm2, %v1833_v48, 0.0 }
 0x385   :  { %v2098_v50 = vpop.eup %1834  ;;  %1008 = vadd.xlane.f32.xlu0 %v1007_v49 }
 0x386   :  { %v1016_v51 = vsel %vm946_vm2, %v2098_v50, 0.0 }
 0x387   :  { %v1837_v52 = vpop.eup %1836  ;;  %1017 = vadd.xlane.f32.xlu1 %v1016_v51 }
 0x388   :  { %v1013_v53 = vsel %vm946_vm2, %v1837_v52, 0.0 }
 0x389   :  { %1014 = vadd.xlane.f32.xlu0 %v1013_v53 }
 0x3b6   :  { %571 = vxpose.xlu0.b32.start [1/2] (short) (narrow) %v371_v57, 32 }
 0x3ba   :  { %572 = vxpose.xlu0.b32.end [2/2] (short) (narrow) %v376_v58, 32 }
 0x3fa   :  { %v1000_v1 = vpop.xlane.xlu1 %999 }
 0x3fc   :  { %v997_v59 = vpop.xlane.xlu0 %996 }
 0x3fd   :  { %1838 = vrcp.f32 %v997_v59 }
 0x3fe   :  { %v1006_v3 = vpop.xlane.xlu1 %1005 }
 0x402   :  { %v1003_v60 = vpop.xlane.xlu0 %1002 }
 0x403   :  { %1840 = vrcp.f32 %v1003_v60 }
 0x404   :  { %1842 = vrcp.f32 %v1000_v1 }
 0x40a   :  { %v1839_v61 = vpop.eup %1838 }
 0x40b   :  { %v1027_v62 = vmul.f32 %v1839_v61, %v1825_v30  ;;  %v1535_v30 = vld [vmem:[#allocation8 + $0x78] sm:$0xff] }
 0x40c   :  { %v1012_v5 = vpop.xlane.xlu1 %1011 }
 0x40d   :  { %1784 = vmatprep.mubr.msk.f32.mxu0 %vm946_vm2, %v1027_v62 }
 0x40e   :  { %v1009_v2 = vpop.xlane.xlu0 %1008 }
 0x40f   :  { %1844 = vrcp.f32 %v1009_v2 }
 0x410   :  { %v1841_v63 = vpop.eup %1840  ;;  %1846 = vrcp.f32 %v1006_v3  ;;  %v1018_v6 = vpop.xlane.xlu1 %1017 }
 0x411   :  { %v1029_v0 = vmul.f32 %v1841_v63, %v1829_v43  ;;  %v1843_v7 = vpop.eup %1842 }
 0x412   :  { %v1015_v4 = vpop.xlane.xlu0 %1014  ;;  %v1028_v10 = vmul.f32 %v1843_v7, %v2083_v26 }
 0x413   :  { %1789 = vmatprep.mubr.msk.f32.mxu1 %vm946_vm2, %v1029_v0  ;;  %1848 = vrcp.f32 %v1015_v4 }
 0x414   :  { %1850 = vrcp.f32 %v1012_v5 }
 0x415   :  { %1852 = vrcp.f32 %v1018_v6 }
 0x41c   :  { %v1845_v9 = vpop.eup %1844 }
 0x41d   :  { %v1847_v11 = vpop.eup %1846  ;;  %v1031_v13 = vmul.f32 %v1845_v9, %v1833_v48 }
 0x41e   :  { %v1030_v15 = vmul.f32 %v1847_v11, %v2088_v35 }
 0x420   :  { %v1849_v14 = vpop.eup %1848 }
 0x421   :  { %v1851_v16 = vpop.eup %1850  ;;  %v1033_v18 = vmul.f32 %v1849_v14, %v1837_v52 }
 0x422   :  { %v1032_v19 = vmul.f32 %v1851_v16, %v2093_v46  ;;  %v1853_v20 = vpop.eup %1852 }
 0x423   :  { %v1034_v22 = vmul.f32 %v1853_v20, %v2098_v50 }
 0x432   :  { %v587_v8 = vpop.trf.xlu0 }
 0x433   :  { %1782 = vmatprep.subr.msk.mxu0 %vm946_vm2, %v587_v8 }
 0x434   :  { %1783 = vmatpush3.xpose.msk.msra.mxu0 %vm946_vm2, %v587_v8 }
 0x436   :  { %v588_v12 = vpop.trf.xlu0 }
 0x437   :  { %1785 = vmatmul.mubr.msk.f32.vlgmr.msra.gmra.mxu0 %vm946_vm2, %v1028_v10  ;;  %1787 = vmatprep.subr.msk.mxu1 %vm946_vm2, %v588_v12 }
 0x438   :  { %1788 = vmatpush3.xpose.msk.msra.mxu1 %vm946_vm2, %v588_v12  ;;  %1794 = vmatprep.mubr.msk.f32.mxu0 %vm946_vm2, %v1031_v13 }
 0x43a   :  { %v589_v17 = vpop.trf.xlu0 }
 0x43b   :  { %1790 = vmatmul.mubr.msk.f32.vlgmr.msra.gmra.mxu1 %vm946_vm2, %v1030_v15  ;;  %1792 = vmatprep.subr.msk.mxu0 %vm946_vm2, %v589_v17 }
 0x43c   :  { %1793 = vmatpush3.xpose.msk.msra.mxu0 %vm946_vm2, %v589_v17  ;;  %1799 = vmatprep.mubr.msk.f32.mxu1 %vm946_vm2, %v1033_v18 }
 0x43d   :  { %1802 = vmatprep.subr.mxu0 %v1535_v30 }
 0x43e   :  { %v590_v21 = vpop.trf.xlu0 }
 0x43f   :  { %1795 = vmatmul.mubr.msk.f32.vlgmr.msra.gmra.mxu0 %vm946_vm2, %v1032_v19  ;;  %1797 = vmatprep.subr.msk.mxu1 %vm946_vm2, %v590_v21 }
 0x440   :  { %1798 = vmatpush3.xpose.msk.msra.mxu1 %vm946_vm2, %v590_v21  ;;  %1803 = vmatpush3.msra.mxu0 %v1535_v30 }
 0x441   :  { %1804 = vmatprep.subr.mxu0 %v1534_v31 }
 0x442   :  { %1805 = vmatpush3.msra.mxu0 %v1534_v31 }
 0x443   :  { %1800 = vmatmul.mubr.msk.f32.vlgmr.msra.gmra.mxu1 %vm946_vm2, %v1034_v22  ;;  %1806 = vmatprep.subr.mxu0 %v1533_v33 }
 0x444   :  { %1807 = vmatpush3.msra.mxu0 %v1533_v33 }
 0x445   :  { %1808 = vmatprep.subr.mxu0 %v1532_v34 }
 0x446   :  { %1809 = vmatpush3.msra.mxu0 %v1532_v34 }
 0x4f7   :  { %v1786_v23 = vpop.f32.mrf.mxu0 }
 0x4f9   :  { %v1110_v24 = vpop.f32.mrf.mxu0 }
 0x4fa   :  { %1371 = vxpose.xlu1.b32.start [1/2] (short) (narrow) %v1110_v24, 8 }
 0x4fb   :  { %v1791_v25 = vpop.f32.mrf.mxu1 }
 0x4fd   :  { %v1194_v26 = vpop.f32.mrf.mxu1 }
 0x4fe   :  { %1372 = vxpose.xlu1.b32.end [2/2] (short) (narrow) %v1786_v23, 8  ;;  %1403 = vxpose.xlu0.b32.start [1/2] (short) (narrow) %v1194_v26, 8 }
 0x4ff   :  { %v1796_v27 = vpop.f32.mrf.mxu0 }
 0x501   :  { %v1278_v28 = vpop.f32.mrf.mxu0 }
 0x502   :  { %1404 = vxpose.xlu0.b32.end [2/2] (short) (narrow) %v1791_v25, 8  ;;  %1435 = vxpose.xlu1.b32.start [1/2] (short) (narrow) %v1278_v28, 8 }
 0x503   :  { %v1801_v29 = vpop.f32.mrf.mxu1 }
 0x505   :  { %v1362_v32 = vpop.f32.mrf.mxu1 }
 0x506   :  { %1436 = vxpose.xlu1.b32.end [2/2] (short) (narrow) %v1796_v27, 8  ;;  %1467 = vxpose.xlu0.b32.start [1/2] (short) (narrow) %v1362_v32, 8 }
 0x50a   :  { %1468 = vxpose.xlu0.b32.end [2/2] (short) (narrow) %v1801_v29, 8 }
 0x576   :  { %v1387_v35 = vpop.trf.xlu1 }
 0x577   :  { %1499 = vxpose.xlu1.b32.start [1/4] (short) (narrow) %v1387_v35, 16 }
 0x57a   :  { %v1419_v36 = vpop.trf.xlu0 }
 0x57b   :  { %1500 = vxpose.xlu1.b32.cont [2/4] (short) (narrow) %v1419_v36, 16 }
 0x57e   :  { %v1451_v37 = vpop.trf.xlu1 }
 0x57f   :  { %1501 = vxpose.xlu1.b32.cont [3/4] (short) (narrow) %v1451_v37, 16 }
 0x582   :  { %v1483_v38 = vpop.trf.xlu0 }
 0x583   :  { %1502 = vxpose.xlu1.b32.end [4/4] (short) (narrow) %v1483_v38, 16 }
 0x5f3   :  { %v1515_v39 = vpop.trf.xlu1 }
 0x5f4   :  { %1810 = vmatprep.mubr.msk.f32.mxu0 %vm109_vm0, %v1515_v39 }
 0x5f7   :  { %v1516_v40 = vpop.trf.xlu1 }
 0x5f8   :  { %1811 = vmatmul.mubr.msk.f32.vlgmr.msra.gmra.mxu0 %vm109_vm0, %v1516_v40 }
 0x6b8   :  { %v1812_v42 = vpop.f32.mrf.mxu0 }
 0x6b9   :  { %v1622_v43 = vadd.f32 %v1812_v42, %v1678_v41 }
 0x6ba   :  { %v1616_v44 = vpop.f32.mrf.mxu0 }
 0x6bb   :  { %1626 = vst.msk [vmem:[#allocation11 + $0x8] sm:$0xff] %vm109_vm0, %v1622_v43  ;;  %v1617_v45 = vadd.f32 %v1678_v41, %v1616_v44 }
 0x6bd   :  { %1625 = vst.msk [vmem:[#allocation11] sm:$0xff] %vm109_vm0, %v1617_v45 }
 0x6be   :  { %1965 = shalt.err (!%p1962_p1)
}
 0x6bf   :  { %1638 = dma.vmem_to_hbm [thread:$0]  %s1633_s30, 256, %s2145_s6, [#allocation4], %s1984_s26, %s1984_s26, %s1985_s27  }
 0x6c0   :  { %1980 = dma.done.wait [#allocation4], 256  }
 0x6c1   :  { %1981 = vsyncadd [#allocation4], 4294967040 }
 0x6c2   :  { %1642 = vsyncpa [#allocation3], 1 }
 0x6c3   :  { %1643 = vsyncpa [#allocation6], 1 }
 0x6c4   :  { %1644 = vsyncpa [#allocation9], 1 }
 0x6c5   :  { %1645 = vsyncpa [#allocation4], 1 }

</bundles_post_ra>
